<compile_context>
chip_gen: v7x
topology: tpu7x:2x2x1
jax: 0.10.0
libtpu: 0.0.40
codegen_flags: <defaults>
</compile_context>

<pallas_src>
import functools

import jax
import jax.numpy as jnp
from jax.experimental import pallas as pl
from jax.experimental.pallas import tpu as pltpu


def _round_up(x, m):
    return ((x + m - 1) // m) * m


def _encoder_kernel(x_ref, wemb_ref, bemb_ref, wih_ref, bg_ref, whh_ref,
                    out_ref, xg_ref, *, seq_len, hidden, batch_tile):
    """One batch tile: spatial embedding + LSTM, emits the final hidden state.

    x_ref    : (T, Bt, 2)   observed (x, y) trajectories (time-major)       f32
    wemb_ref : (2, E)       spatial_embedding.weight^T                      f32
    bemb_ref : (1, E)       spatial_embedding.bias                          f32
    wih_ref  : (E, 4H)      LSTM weight_ih_l0^T  (gate order i, f, g, o)    bf16
    bg_ref   : (1, 4H)      bias_ih_l0 + bias_hh_l0                         f32
    whh_ref  : (H, 4H)      LSTM weight_hh_l0^T                             bf16
    out_ref  : (Bt, H)      final hidden state h_T for this batch tile      f32
    xg_ref   : (T, Bt, 4H)  VMEM scratch: per-step input-gate pre-activations
    """
    T, H, Bt = seq_len, hidden, batch_tile

    # ---- Spatial embedding: contraction dim is only 2 -> two VPU FMAs, not a
    # padded MXU matmul.  Bt is a multiple of 8, so this reshape is layout-free.
    x = x_ref[...].reshape(T * Bt, 2).astype(jnp.float32)          # (T*Bt, 2)
    wemb = wemb_ref[...]                                           # (2, E)
    emb = (x[:, 0:1] * wemb[0:1, :]
           + x[:, 1:2] * wemb[1:2, :]
           + bemb_ref[...])                                        # (T*Bt, E)

    # ---- Input projection for ALL (t, b) rows in ONE lane-dense MXU matmul:
    # bf16 operands, f32 accumulation.
    xg = jnp.dot(emb.astype(jnp.bfloat16), wih_ref[...],
                 preferred_element_type=jnp.float32)               # (T*Bt, 4H)
    xg_ref[...] = (xg + bg_ref[...]).reshape(T, Bt, 4 * H)

    whh = whh_ref[...]                                             # (H, 4H) bf16

    # Full-width activations + lane-mask select: the g-gate occupies lanes
    # [2H, 3H); sigmoid/tanh run on the whole (Bt, 4H) tile (EUP slot is
    # otherwise idle), avoiding unaligned per-gate transcendental slices.
    lane = jax.lax.broadcasted_iota(jnp.int32, (1, 4 * H), 1)
    is_g = jnp.logical_and(lane >= 2 * H, lane < 3 * H)

    def step(t, carry):
        h, c = carry
        gates = xg_ref[t] + jnp.dot(h.astype(jnp.bfloat16), whh,
                                    preferred_element_type=jnp.float32)
        act = jnp.where(is_g, jnp.tanh(gates), jax.nn.sigmoid(gates))
        i_g = act[:, 0 * H:1 * H]
        f_g = act[:, 1 * H:2 * H]
        g_g = act[:, 2 * H:3 * H]
        o_g = act[:, 3 * H:4 * H]
        c = f_g * c + i_g * g_g
        h = o_g * jnp.tanh(c)
        return h, c

    h0 = jnp.zeros((Bt, H), jnp.float32)
    c0 = jnp.zeros((Bt, H), jnp.float32)
    h, _ = jax.lax.fori_loop(0, T, step, (h0, c0),
                             unroll=(T if T <= 16 else 8))

    out_ref[...] = h.astype(out_ref.dtype)


def encoder_forward(obs_traj, params):
    """Encoder.forward: obs_traj (T, B, 2) -> final_h (num_layers=1, B, H)."""
    T, B, two = obs_traj.shape
    assert two == 2
    w_emb_t, b_emb, w_ih_t, b_gates, w_hh_t = params
    E = w_emb_t.shape[1]
    H = w_hh_t.shape[0]

    # Batch tile: a multiple of 8 sublanes, capped at 128 rows so the f32 gate
    # scratch (T*Bt*4H*4 B ~ 1 MiB at T=8, H=64) fits v5e's 16 MiB scoped VMEM
    # and large B produces >=2 "parallel" grid steps (v7x dual-TensorCore).
    Bt = min(128, _round_up(B, 8))
    B_pad = _round_up(B, Bt)
    if B_pad != B:
        obs_traj = jnp.pad(obs_traj, ((0, 0), (0, B_pad - B), (0, 0)))
    grid = (B_pad // Bt,)

    out = pl.pallas_call(
        functools.partial(_encoder_kernel, seq_len=T, hidden=H, batch_tile=Bt),
        out_shape=jax.ShapeDtypeStruct((B_pad, H), jnp.float32),
        grid_spec=pltpu.PrefetchScalarGridSpec(
            num_scalar_prefetch=0,
            grid=grid,
            in_specs=[
                pl.BlockSpec((T, Bt, 2), lambda b: (0, b, 0)),
                pl.BlockSpec((2, E), lambda b: (0, 0)),
                pl.BlockSpec((1, E), lambda b: (0, 0)),
                pl.BlockSpec((E, 4 * H), lambda b: (0, 0)),
                pl.BlockSpec((1, 4 * H), lambda b: (0, 0)),
                pl.BlockSpec((H, 4 * H), lambda b: (0, 0)),
            ],
            out_specs=pl.BlockSpec((Bt, H), lambda b: (b, 0)),
            scratch_shapes=[pltpu.VMEM((T, Bt, 4 * H), jnp.float32)],
        ),
        compiler_params=pltpu.CompilerParams(
            dimension_semantics=("parallel",)),
    )(obs_traj, w_emb_t, b_emb, w_ih_t, b_gates, w_hh_t)

    # PyTorch state[0] layout: (num_layers=1, batch, h_dim)
    return out[:B][None]


def init_encoder_params(key, embedding_dim=64, h_dim=64):
    """PyTorch-equivalent shapes/init, stored pre-transposed (MXU weights bf16)."""
    E, H = embedding_dim, h_dim
    k1, k2, k3, k4, k5, k6 = jax.random.split(key, 6)

    # nn.Linear(2, E): U(-1/sqrt(fan_in), 1/sqrt(fan_in)), fan_in = 2
    lb = 1.0 / jnp.sqrt(2.0)
    w_emb = jax.random.uniform(k1, (E, 2), jnp.float32, -lb, lb)
    b_emb = jax.random.uniform(k2, (E,), jnp.float32, -lb, lb)

    # nn.LSTM(E, H): all params U(-1/sqrt(H), 1/sqrt(H)); gate order i, f, g, o
    sb = 1.0 / jnp.sqrt(float(H))
    w_ih = jax.random.uniform(k3, (4 * H, E), jnp.float32, -sb, sb)
    w_hh = jax.random.uniform(k4, (4 * H, H), jnp.float32, -sb, sb)
    b_ih = jax.random.uniform(k5, (4 * H,), jnp.float32, -sb, sb)
    b_hh = jax.random.uniform(k6, (4 * H,), jnp.float32, -sb, sb)

    return (w_emb.T,                                  # (2, E)   f32
            b_emb.reshape(1, E),                      # (1, E)   f32
            w_ih.T.astype(jnp.bfloat16),              # (E, 4H)  bf16
            (b_ih + b_hh).reshape(1, 4 * H),          # (1, 4H)  f32
            w_hh.T.astype(jnp.bfloat16))              # (H, 4H)  bf16


def encoder_reference(obs_traj, params):
    """Pure-JAX f32 reference of Encoder.forward (for correctness check)."""
    T, B, _ = obs_traj.shape
    w_emb_t, b_emb, w_ih_t, b_gates, w_hh_t = params
    w_ih = w_ih_t.astype(jnp.float32)
    w_hh = w_hh_t.astype(jnp.float32)
    H = w_hh.shape[0]
    emb = obs_traj.reshape(-1, 2) @ w_emb_t + b_emb               # (T*B, E)
    emb = emb.reshape(T, B, -1)
    h = jnp.zeros((B, H), jnp.float32)
    c = jnp.zeros((B, H), jnp.float32)
    for t in range(T):
        gates = emb[t] @ w_ih + b_gates + h @ w_hh
        i_g = jax.nn.sigmoid(gates[:, 0 * H:1 * H])
        f_g = jax.nn.sigmoid(gates[:, 1 * H:2 * H])
        g_g = jnp.tanh(gates[:, 2 * H:3 * H])
        o_g = jax.nn.sigmoid(gates[:, 3 * H:4 * H])
        c = f_g * c + i_g * g_g
        h = o_g * jnp.tanh(c)
    return h[None]                                                # (1, B, H)


if __name__ == "__main__":
    # Module defaults: embedding_dim=64, h_dim=64, num_layers=1, dropout=0.0.
    obs_len, batch = 8, 2
    embedding_dim, h_dim = 64, 64

    key = jax.random.PRNGKey(0)
    kx, kp = jax.random.split(key)
    obs_traj = jax.random.normal(kx, (obs_len, batch, 2), dtype=jnp.float32)
    params = init_encoder_params(kp, embedding_dim, h_dim)

    final_h = jax.block_until_ready(encoder_forward(obs_traj, params))
    assert final_h.shape == (1, batch, h_dim), final_h.shape
    assert bool(jnp.all(jnp.isfinite(final_h)))

    ref = encoder_reference(obs_traj, params)
    err = float(jnp.max(jnp.abs(final_h - ref)))
    assert bool(jnp.allclose(final_h, ref, atol=2e-2, rtol=2e-2)), err

    print("KERNEL_OK")
</pallas_src>

<mosaic_0001>
module attributes {stable_mosaic.version = 11 : i64} {
  func.func @_encoder_kernel(%arg0: i32, %arg1: memref<8x8x2xf32, #tpu.memory_space<vmem>>, %arg2: memref<2x64xf32, #tpu.memory_space<vmem>>, %arg3: memref<1x64xf32, #tpu.memory_space<vmem>>, %arg4: memref<64x256xbf16, #tpu.memory_space<vmem>>, %arg5: memref<1x256xf32, #tpu.memory_space<vmem>>, %arg6: memref<64x256xbf16, #tpu.memory_space<vmem>>, %arg7: memref<8x64xf32, #tpu.memory_space<vmem>>, %arg8: memref<8x8x256xf32, #tpu.memory_space<vmem>>) attributes {dimension_semantics = [#tpu.dimension_semantics<parallel>], iteration_bounds = array<i64: 1>, scalar_prefetch = 0 : i64, scratch_operands = 1 : i64, tpu.core_type = #tpu.core_type<tc>, window_params = [{transform_indices = @transform_0, window_bounds = array<i64: 8, 8, 2>}, {pipeline_mode = #tpu.pipeline_mode<synchronous>, transform_indices = @transform_1, window_bounds = array<i64: 2, 64>}, {pipeline_mode = #tpu.pipeline_mode<synchronous>, transform_indices = @transform_2, window_bounds = array<i64: 1, 64>}, {pipeline_mode = #tpu.pipeline_mode<synchronous>, transform_indices = @transform_3, window_bounds = array<i64: 64, 256>}, {pipeline_mode = #tpu.pipeline_mode<synchronous>, transform_indices = @transform_4, window_bounds = array<i64: 1, 256>}, {pipeline_mode = #tpu.pipeline_mode<synchronous>, transform_indices = @transform_5, window_bounds = array<i64: 64, 256>}, {transform_indices = @transform_6, window_bounds = array<i64: 8, 64>}]} {
    %c0 = arith.constant 0 : index
    %c0_0 = arith.constant 0 : index
    %c0_1 = arith.constant 0 : index
    %0 = vector.load %arg1[%c0, %c0_0, %c0_1] : memref<8x8x2xf32, #tpu.memory_space<vmem>>, vector<8x8x2xf32>
    %1 = vector.shape_cast %0 : vector<8x8x2xf32> to vector<64x2xf32>
    %c0_2 = arith.constant 0 : index
    %c0_3 = arith.constant 0 : index
    %2 = vector.load %arg2[%c0_2, %c0_3] : memref<2x64xf32, #tpu.memory_space<vmem>>, vector<2x64xf32>
    %3 = vector.extract_strided_slice %1 {offsets = [0, 0], sizes = [64, 1], strides = [1, 1]} : vector<64x2xf32> to vector<64x1xf32>
    %4 = vector.extract_strided_slice %2 {offsets = [0, 0], sizes = [1, 64], strides = [1, 1]} : vector<2x64xf32> to vector<1x64xf32>
    %5 = vector.broadcast %3 : vector<64x1xf32> to vector<64x64xf32>
    %6 = vector.broadcast %4 : vector<1x64xf32> to vector<64x64xf32>
    %7 = arith.mulf %5, %6 : vector<64x64xf32>
    %8 = vector.extract_strided_slice %1 {offsets = [0, 1], sizes = [64, 1], strides = [1, 1]} : vector<64x2xf32> to vector<64x1xf32>
    %9 = vector.extract_strided_slice %2 {offsets = [1, 0], sizes = [1, 64], strides = [1, 1]} : vector<2x64xf32> to vector<1x64xf32>
    %10 = vector.broadcast %8 : vector<64x1xf32> to vector<64x64xf32>
    %11 = vector.broadcast %9 : vector<1x64xf32> to vector<64x64xf32>
    %12 = arith.mulf %10, %11 : vector<64x64xf32>
    %13 = arith.addf %7, %12 : vector<64x64xf32>
    %c0_4 = arith.constant 0 : index
    %c0_5 = arith.constant 0 : index
    %14 = vector.load %arg3[%c0_4, %c0_5] : memref<1x64xf32, #tpu.memory_space<vmem>>, vector<1x64xf32>
    %15 = vector.broadcast %14 : vector<1x64xf32> to vector<64x64xf32>
    %16 = arith.addf %13, %15 : vector<64x64xf32>
    %17 = arith.truncf %16 : vector<64x64xf32> to vector<64x64xbf16>
    %c0_6 = arith.constant 0 : index
    %c0_7 = arith.constant 0 : index
    %18 = vector.load %arg4[%c0_6, %c0_7] : memref<64x256xbf16, #tpu.memory_space<vmem>>, vector<64x256xbf16>
    %cst = arith.constant dense<0.000000e+00> : vector<64x256xf32>
    %19 = tpu.matmul %17, %18, %cst {dimension_numbers = #tpu.dot_dimension_numbers<[1], [0], [0], [1], [0, 0, 1, 1], [], []>} : vector<64x64xbf16>, vector<64x256xbf16>, vector<64x256xf32> -> vector<64x256xf32>
    %c0_8 = arith.constant 0 : index
    %c0_9 = arith.constant 0 : index
    %20 = vector.load %arg5[%c0_8, %c0_9] : memref<1x256xf32, #tpu.memory_space<vmem>>, vector<1x256xf32>
    %21 = vector.broadcast %20 : vector<1x256xf32> to vector<64x256xf32>
    %22 = arith.addf %19, %21 : vector<64x256xf32>
    %23 = vector.shape_cast %22 : vector<64x256xf32> to vector<8x8x256xf32>
    %c0_10 = arith.constant 0 : index
    %c0_11 = arith.constant 0 : index
    %c0_12 = arith.constant 0 : index
    %24 = vector.load %arg8[%c0_10, %c0_11, %c0_12] : memref<8x8x256xf32, #tpu.memory_space<vmem>>, vector<8x8x256xf32>
    tpu.vector_store %arg8[%c0_10, %c0_11, %c0_12], %23 {strides = array<i32>} : memref<8x8x256xf32, #tpu.memory_space<vmem>>, vector<8x8x256xf32>,
    %c0_13 = arith.constant 0 : index
    %c0_14 = arith.constant 0 : index
    %25 = vector.load %arg6[%c0_13, %c0_14] : memref<64x256xbf16, #tpu.memory_space<vmem>>, vector<64x256xbf16>
    %26 = tpu.iota {dimensions = array<i32: 1>} : vector<1x256xi32>
    %c128_i32 = arith.constant 128 : i32
    %27 = vector.broadcast %c128_i32 : i32 to vector<1x256xi32>
    %28 = arith.cmpi sge, %26, %27 : vector<1x256xi32>
    %c192_i32 = arith.constant 192 : i32
    %29 = vector.broadcast %c192_i32 : i32 to vector<1x256xi32>
    %30 = arith.cmpi slt, %26, %29 : vector<1x256xi32>
    %31 = arith.andi %28, %30 : vector<1x256xi1>
    %cst_15 = arith.constant 0.000000e+00 : f32
    %32 = vector.broadcast %cst_15 : f32 to vector<8x64xf32>
    %cst_16 = arith.constant 0.000000e+00 : f32
    %33 = vector.broadcast %cst_16 : f32 to vector<8x64xf32>
    %c0_i32 = arith.constant 0 : i32
    %34 = arith.index_cast %c0_i32 : i32 to index
    %c0_17 = arith.constant 0 : index
    %c0_18 = arith.constant 0 : index
    %35 = vector.load %arg8[%34, %c0_17, %c0_18] : memref<8x8x256xf32, #tpu.memory_space<vmem>>, vector<1x8x256xf32>
    %36 = vector.shape_cast %35 : vector<1x8x256xf32> to vector<8x256xf32>
    %37 = arith.truncf %32 : vector<8x64xf32> to vector<8x64xbf16>
    %cst_19 = arith.constant dense<0.000000e+00> : vector<8x256xf32>
    %38 = tpu.matmul %37, %25, %cst_19 {dimension_numbers = #tpu.dot_dimension_numbers<[1], [0], [0], [1], [0, 0, 1, 1], [], []>} : vector<8x64xbf16>, vector<64x256xbf16>, vector<8x256xf32> -> vector<8x256xf32>
    %39 = arith.addf %36, %38 : vector<8x256xf32>
    %40 = math.tanh %39 : vector<8x256xf32>
    %41 = arith.negf %39 : vector<8x256xf32>
    %42 = math.exp %41 : vector<8x256xf32>
    %cst_20 = arith.constant 1.000000e+00 : f32
    %43 = vector.broadcast %cst_20 : f32 to vector<8x256xf32>
    %44 = arith.addf %43, %42 : vector<8x256xf32>
    %45 = arith.divf %43, %44 : vector<8x256xf32>
    %46 = vector.shape_cast %31 : vector<1x256xi1> to vector<1x256xi1>
    %47 = vector.broadcast %46 : vector<1x256xi1> to vector<8x256xi1>
    %48 = arith.select %47, %40, %45 : vector<8x256xi1>, vector<8x256xf32>
    %49 = vector.extract_strided_slice %48 {offsets = [0, 0], sizes = [8, 64], strides = [1, 1]} : vector<8x256xf32> to vector<8x64xf32>
    %50 = vector.extract_strided_slice %48 {offsets = [0, 64], sizes = [8, 64], strides = [1, 1]} : vector<8x256xf32> to vector<8x64xf32>
    %51 = vector.extract_strided_slice %48 {offsets = [0, 128], sizes = [8, 64], strides = [1, 1]} : vector<8x256xf32> to vector<8x64xf32>
    %52 = vector.extract_strided_slice %48 {offsets = [0, 192], sizes = [8, 64], strides = [1, 1]} : vector<8x256xf32> to vector<8x64xf32>
    %53 = arith.mulf %50, %33 : vector<8x64xf32>
    %54 = arith.mulf %49, %51 : vector<8x64xf32>
    %55 = arith.addf %53, %54 : vector<8x64xf32>
    %56 = math.tanh %55 : vector<8x64xf32>
    %57 = arith.mulf %52, %56 : vector<8x64xf32>
    %c1_i32 = arith.constant 1 : i32
    %58 = arith.index_cast %c1_i32 : i32 to index
    %c0_21 = arith.constant 0 : index
    %c0_22 = arith.constant 0 : index
    %59 = vector.load %arg8[%58, %c0_21, %c0_22] : memref<8x8x256xf32, #tpu.memory_space<vmem>>, vector<1x8x256xf32>
    %60 = vector.shape_cast %59 : vector<1x8x256xf32> to vector<8x256xf32>
    %61 = arith.truncf %57 : vector<8x64xf32> to vector<8x64xbf16>
    %cst_23 = arith.constant dense<0.000000e+00> : vector<8x256xf32>
    %62 = tpu.matmul %61, %25, %cst_23 {dimension_numbers = #tpu.dot_dimension_numbers<[1], [0], [0], [1], [0, 0, 1, 1], [], []>} : vector<8x64xbf16>, vector<64x256xbf16>, vector<8x256xf32> -> vector<8x256xf32>
    %63 = arith.addf %60, %62 : vector<8x256xf32>
    %64 = math.tanh %63 : vector<8x256xf32>
    %65 = arith.negf %63 : vector<8x256xf32>
    %66 = math.exp %65 : vector<8x256xf32>
    %cst_24 = arith.constant 1.000000e+00 : f32
    %67 = vector.broadcast %cst_24 : f32 to vector<8x256xf32>
    %68 = arith.addf %67, %66 : vector<8x256xf32>
    %69 = arith.divf %67, %68 : vector<8x256xf32>
    %70 = vector.shape_cast %31 : vector<1x256xi1> to vector<1x256xi1>
    %71 = vector.broadcast %70 : vector<1x256xi1> to vector<8x256xi1>
    %72 = arith.select %71, %64, %69 : vector<8x256xi1>, vector<8x256xf32>
    %73 = vector.extract_strided_slice %72 {offsets = [0, 0], sizes = [8, 64], strides = [1, 1]} : vector<8x256xf32> to vector<8x64xf32>
    %74 = vector.extract_strided_slice %72 {offsets = [0, 64], sizes = [8, 64], strides = [1, 1]} : vector<8x256xf32> to vector<8x64xf32>
    %75 = vector.extract_strided_slice %72 {offsets = [0, 128], sizes = [8, 64], strides = [1, 1]} : vector<8x256xf32> to vector<8x64xf32>
    %76 = vector.extract_strided_slice %72 {offsets = [0, 192], sizes = [8, 64], strides = [1, 1]} : vector<8x256xf32> to vector<8x64xf32>
    %77 = arith.mulf %74, %55 : vector<8x64xf32>
    %78 = arith.mulf %73, %75 : vector<8x64xf32>
    %79 = arith.addf %77, %78 : vector<8x64xf32>
    %80 = math.tanh %79 : vector<8x64xf32>
    %81 = arith.mulf %76, %80 : vector<8x64xf32>
    %c2_i32 = arith.constant 2 : i32
    %82 = arith.index_cast %c2_i32 : i32 to index
    %c0_25 = arith.constant 0 : index
    %c0_26 = arith.constant 0 : index
    %83 = vector.load %arg8[%82, %c0_25, %c0_26] : memref<8x8x256xf32, #tpu.memory_space<vmem>>, vector<1x8x256xf32>
    %84 = vector.shape_cast %83 : vector<1x8x256xf32> to vector<8x256xf32>
    %85 = arith.truncf %81 : vector<8x64xf32> to vector<8x64xbf16>
    %cst_27 = arith.constant dense<0.000000e+00> : vector<8x256xf32>
    %86 = tpu.matmul %85, %25, %cst_27 {dimension_numbers = #tpu.dot_dimension_numbers<[1], [0], [0], [1], [0, 0, 1, 1], [], []>} : vector<8x64xbf16>, vector<64x256xbf16>, vector<8x256xf32> -> vector<8x256xf32>
    %87 = arith.addf %84, %86 : vector<8x256xf32>
    %88 = math.tanh %87 : vector<8x256xf32>
    %89 = arith.negf %87 : vector<8x256xf32>
    %90 = math.exp %89 : vector<8x256xf32>
    %cst_28 = arith.constant 1.000000e+00 : f32
    %91 = vector.broadcast %cst_28 : f32 to vector<8x256xf32>
    %92 = arith.addf %91, %90 : vector<8x256xf32>
    %93 = arith.divf %91, %92 : vector<8x256xf32>
    %94 = vector.shape_cast %31 : vector<1x256xi1> to vector<1x256xi1>
    %95 = vector.broadcast %94 : vector<1x256xi1> to vector<8x256xi1>
    %96 = arith.select %95, %88, %93 : vector<8x256xi1>, vector<8x256xf32>
    %97 = vector.extract_strided_slice %96 {offsets = [0, 0], sizes = [8, 64], strides = [1, 1]} : vector<8x256xf32> to vector<8x64xf32>
    %98 = vector.extract_strided_slice %96 {offsets = [0, 64], sizes = [8, 64], strides = [1, 1]} : vector<8x256xf32> to vector<8x64xf32>
    %99 = vector.extract_strided_slice %96 {offsets = [0, 128], sizes = [8, 64], strides = [1, 1]} : vector<8x256xf32> to vector<8x64xf32>
    %100 = vector.extract_strided_slice %96 {offsets = [0, 192], sizes = [8, 64], strides = [1, 1]} : vector<8x256xf32> to vector<8x64xf32>
    %101 = arith.mulf %98, %79 : vector<8x64xf32>
    %102 = arith.mulf %97, %99 : vector<8x64xf32>
    %103 = arith.addf %101, %102 : vector<8x64xf32>
    %104 = math.tanh %103 : vector<8x64xf32>
    %105 = arith.mulf %100, %104 : vector<8x64xf32>
    %c3_i32 = arith.constant 3 : i32
    %106 = arith.index_cast %c3_i32 : i32 to index
    %c0_29 = arith.constant 0 : index
    %c0_30 = arith.constant 0 : index
    %107 = vector.load %arg8[%106, %c0_29, %c0_30] : memref<8x8x256xf32, #tpu.memory_space<vmem>>, vector<1x8x256xf32>
    %108 = vector.shape_cast %107 : vector<1x8x256xf32> to vector<8x256xf32>
    %109 = arith.truncf %105 : vector<8x64xf32> to vector<8x64xbf16>
    %cst_31 = arith.constant dense<0.000000e+00> : vector<8x256xf32>
    %110 = tpu.matmul %109, %25, %cst_31 {dimension_numbers = #tpu.dot_dimension_numbers<[1], [0], [0], [1], [0, 0, 1, 1], [], []>} : vector<8x64xbf16>, vector<64x256xbf16>, vector<8x256xf32> -> vector<8x256xf32>
    %111 = arith.addf %108, %110 : vector<8x256xf32>
    %112 = math.tanh %111 : vector<8x256xf32>
    %113 = arith.negf %111 : vector<8x256xf32>
    %114 = math.exp %113 : vector<8x256xf32>
    %cst_32 = arith.constant 1.000000e+00 : f32
    %115 = vector.broadcast %cst_32 : f32 to vector<8x256xf32>
    %116 = arith.addf %115, %114 : vector<8x256xf32>
    %117 = arith.divf %115, %116 : vector<8x256xf32>
    %118 = vector.shape_cast %31 : vector<1x256xi1> to vector<1x256xi1>
    %119 = vector.broadcast %118 : vector<1x256xi1> to vector<8x256xi1>
    %120 = arith.select %119, %112, %117 : vector<8x256xi1>, vector<8x256xf32>
    %121 = vector.extract_strided_slice %120 {offsets = [0, 0], sizes = [8, 64], strides = [1, 1]} : vector<8x256xf32> to vector<8x64xf32>
    %122 = vector.extract_strided_slice %120 {offsets = [0, 64], sizes = [8, 64], strides = [1, 1]} : vector<8x256xf32> to vector<8x64xf32>
    %123 = vector.extract_strided_slice %120 {offsets = [0, 128], sizes = [8, 64], strides = [1, 1]} : vector<8x256xf32> to vector<8x64xf32>
    %124 = vector.extract_strided_slice %120 {offsets = [0, 192], sizes = [8, 64], strides = [1, 1]} : vector<8x256xf32> to vector<8x64xf32>
    %125 = arith.mulf %122, %103 : vector<8x64xf32>
    %126 = arith.mulf %121, %123 : vector<8x64xf32>
    %127 = arith.addf %125, %126 : vector<8x64xf32>
    %128 = math.tanh %127 : vector<8x64xf32>
    %129 = arith.mulf %124, %128 : vector<8x64xf32>
    %c4_i32 = arith.constant 4 : i32
    %130 = arith.index_cast %c4_i32 : i32 to index
    %c0_33 = arith.constant 0 : index
    %c0_34 = arith.constant 0 : index
    %131 = vector.load %arg8[%130, %c0_33, %c0_34] : memref<8x8x256xf32, #tpu.memory_space<vmem>>, vector<1x8x256xf32>
    %132 = vector.shape_cast %131 : vector<1x8x256xf32> to vector<8x256xf32>
    %133 = arith.truncf %129 : vector<8x64xf32> to vector<8x64xbf16>
    %cst_35 = arith.constant dense<0.000000e+00> : vector<8x256xf32>
    %134 = tpu.matmul %133, %25, %cst_35 {dimension_numbers = #tpu.dot_dimension_numbers<[1], [0], [0], [1], [0, 0, 1, 1], [], []>} : vector<8x64xbf16>, vector<64x256xbf16>, vector<8x256xf32> -> vector<8x256xf32>
    %135 = arith.addf %132, %134 : vector<8x256xf32>
    %136 = math.tanh %135 : vector<8x256xf32>
    %137 = arith.negf %135 : vector<8x256xf32>
    %138 = math.exp %137 : vector<8x256xf32>
    %cst_36 = arith.constant 1.000000e+00 : f32
    %139 = vector.broadcast %cst_36 : f32 to vector<8x256xf32>
    %140 = arith.addf %139, %138 : vector<8x256xf32>
    %141 = arith.divf %139, %140 : vector<8x256xf32>
    %142 = vector.shape_cast %31 : vector<1x256xi1> to vector<1x256xi1>
    %143 = vector.broadcast %142 : vector<1x256xi1> to vector<8x256xi1>
    %144 = arith.select %143, %136, %141 : vector<8x256xi1>, vector<8x256xf32>
    %145 = vector.extract_strided_slice %144 {offsets = [0, 0], sizes = [8, 64], strides = [1, 1]} : vector<8x256xf32> to vector<8x64xf32>
    %146 = vector.extract_strided_slice %144 {offsets = [0, 64], sizes = [8, 64], strides = [1, 1]} : vector<8x256xf32> to vector<8x64xf32>
    %147 = vector.extract_strided_slice %144 {offsets = [0, 128], sizes = [8, 64], strides = [1, 1]} : vector<8x256xf32> to vector<8x64xf32>
    %148 = vector.extract_strided_slice %144 {offsets = [0, 192], sizes = [8, 64], strides = [1, 1]} : vector<8x256xf32> to vector<8x64xf32>
    %149 = arith.mulf %146, %127 : vector<8x64xf32>
    %150 = arith.mulf %145, %147 : vector<8x64xf32>
    %151 = arith.addf %149, %150 : vector<8x64xf32>
    %152 = math.tanh %151 : vector<8x64xf32>
    %153 = arith.mulf %148, %152 : vector<8x64xf32>
    %c5_i32 = arith.constant 5 : i32
    %154 = arith.index_cast %c5_i32 : i32 to index
    %c0_37 = arith.constant 0 : index
    %c0_38 = arith.constant 0 : index
    %155 = vector.load %arg8[%154, %c0_37, %c0_38] : memref<8x8x256xf32, #tpu.memory_space<vmem>>, vector<1x8x256xf32>
    %156 = vector.shape_cast %155 : vector<1x8x256xf32> to vector<8x256xf32>
    %157 = arith.truncf %153 : vector<8x64xf32> to vector<8x64xbf16>
    %cst_39 = arith.constant dense<0.000000e+00> : vector<8x256xf32>
    %158 = tpu.matmul %157, %25, %cst_39 {dimension_numbers = #tpu.dot_dimension_numbers<[1], [0], [0], [1], [0, 0, 1, 1], [], []>} : vector<8x64xbf16>, vector<64x256xbf16>, vector<8x256xf32> -> vector<8x256xf32>
    %159 = arith.addf %156, %158 : vector<8x256xf32>
    %160 = math.tanh %159 : vector<8x256xf32>
    %161 = arith.negf %159 : vector<8x256xf32>
    %162 = math.exp %161 : vector<8x256xf32>
    %cst_40 = arith.constant 1.000000e+00 : f32
    %163 = vector.broadcast %cst_40 : f32 to vector<8x256xf32>
    %164 = arith.addf %163, %162 : vector<8x256xf32>
    %165 = arith.divf %163, %164 : vector<8x256xf32>
    %166 = vector.shape_cast %31 : vector<1x256xi1> to vector<1x256xi1>
    %167 = vector.broadcast %166 : vector<1x256xi1> to vector<8x256xi1>
    %168 = arith.select %167, %160, %165 : vector<8x256xi1>, vector<8x256xf32>
    %169 = vector.extract_strided_slice %168 {offsets = [0, 0], sizes = [8, 64], strides = [1, 1]} : vector<8x256xf32> to vector<8x64xf32>
    %170 = vector.extract_strided_slice %168 {offsets = [0, 64], sizes = [8, 64], strides = [1, 1]} : vector<8x256xf32> to vector<8x64xf32>
    %171 = vector.extract_strided_slice %168 {offsets = [0, 128], sizes = [8, 64], strides = [1, 1]} : vector<8x256xf32> to vector<8x64xf32>
    %172 = vector.extract_strided_slice %168 {offsets = [0, 192], sizes = [8, 64], strides = [1, 1]} : vector<8x256xf32> to vector<8x64xf32>
    %173 = arith.mulf %170, %151 : vector<8x64xf32>
    %174 = arith.mulf %169, %171 : vector<8x64xf32>
    %175 = arith.addf %173, %174 : vector<8x64xf32>
    %176 = math.tanh %175 : vector<8x64xf32>
    %177 = arith.mulf %172, %176 : vector<8x64xf32>
    %c6_i32 = arith.constant 6 : i32
    %178 = arith.index_cast %c6_i32 : i32 to index
    %c0_41 = arith.constant 0 : index
    %c0_42 = arith.constant 0 : index
    %179 = vector.load %arg8[%178, %c0_41, %c0_42] : memref<8x8x256xf32, #tpu.memory_space<vmem>>, vector<1x8x256xf32>
    %180 = vector.shape_cast %179 : vector<1x8x256xf32> to vector<8x256xf32>
    %181 = arith.truncf %177 : vector<8x64xf32> to vector<8x64xbf16>
    %cst_43 = arith.constant dense<0.000000e+00> : vector<8x256xf32>
    %182 = tpu.matmul %181, %25, %cst_43 {dimension_numbers = #tpu.dot_dimension_numbers<[1], [0], [0], [1], [0, 0, 1, 1], [], []>} : vector<8x64xbf16>, vector<64x256xbf16>, vector<8x256xf32> -> vector<8x256xf32>
    %183 = arith.addf %180, %182 : vector<8x256xf32>
    %184 = math.tanh %183 : vector<8x256xf32>
    %185 = arith.negf %183 : vector<8x256xf32>
    %186 = math.exp %185 : vector<8x256xf32>
    %cst_44 = arith.constant 1.000000e+00 : f32
    %187 = vector.broadcast %cst_44 : f32 to vector<8x256xf32>
    %188 = arith.addf %187, %186 : vector<8x256xf32>
    %189 = arith.divf %187, %188 : vector<8x256xf32>
    %190 = vector.shape_cast %31 : vector<1x256xi1> to vector<1x256xi1>
    %191 = vector.broadcast %190 : vector<1x256xi1> to vector<8x256xi1>
    %192 = arith.select %191, %184, %189 : vector<8x256xi1>, vector<8x256xf32>
    %193 = vector.extract_strided_slice %192 {offsets = [0, 0], sizes = [8, 64], strides = [1, 1]} : vector<8x256xf32> to vector<8x64xf32>
    %194 = vector.extract_strided_slice %192 {offsets = [0, 64], sizes = [8, 64], strides = [1, 1]} : vector<8x256xf32> to vector<8x64xf32>
    %195 = vector.extract_strided_slice %192 {offsets = [0, 128], sizes = [8, 64], strides = [1, 1]} : vector<8x256xf32> to vector<8x64xf32>
    %196 = vector.extract_strided_slice %192 {offsets = [0, 192], sizes = [8, 64], strides = [1, 1]} : vector<8x256xf32> to vector<8x64xf32>
    %197 = arith.mulf %194, %175 : vector<8x64xf32>
    %198 = arith.mulf %193, %195 : vector<8x64xf32>
    %199 = arith.addf %197, %198 : vector<8x64xf32>
    %200 = math.tanh %199 : vector<8x64xf32>
    %201 = arith.mulf %196, %200 : vector<8x64xf32>
    %c7_i32 = arith.constant 7 : i32
    %202 = arith.index_cast %c7_i32 : i32 to index
    %c0_45 = arith.constant 0 : index
    %c0_46 = arith.constant 0 : index
    %203 = vector.load %arg8[%202, %c0_45, %c0_46] : memref<8x8x256xf32, #tpu.memory_space<vmem>>, vector<1x8x256xf32>
    %204 = vector.shape_cast %203 : vector<1x8x256xf32> to vector<8x256xf32>
    %205 = arith.truncf %201 : vector<8x64xf32> to vector<8x64xbf16>
    %cst_47 = arith.constant dense<0.000000e+00> : vector<8x256xf32>
    %206 = tpu.matmul %205, %25, %cst_47 {dimension_numbers = #tpu.dot_dimension_numbers<[1], [0], [0], [1], [0, 0, 1, 1], [], []>} : vector<8x64xbf16>, vector<64x256xbf16>, vector<8x256xf32> -> vector<8x256xf32>
    %207 = arith.addf %204, %206 : vector<8x256xf32>
    %208 = math.tanh %207 : vector<8x256xf32>
    %209 = arith.negf %207 : vector<8x256xf32>
    %210 = math.exp %209 : vector<8x256xf32>
    %cst_48 = arith.constant 1.000000e+00 : f32
    %211 = vector.broadcast %cst_48 : f32 to vector<8x256xf32>
    %212 = arith.addf %211, %210 : vector<8x256xf32>
    %213 = arith.divf %211, %212 : vector<8x256xf32>
    %214 = vector.shape_cast %31 : vector<1x256xi1> to vector<1x256xi1>
    %215 = vector.broadcast %214 : vector<1x256xi1> to vector<8x256xi1>
    %216 = arith.select %215, %208, %213 : vector<8x256xi1>, vector<8x256xf32>
    %217 = vector.extract_strided_slice %216 {offsets = [0, 0], sizes = [8, 64], strides = [1, 1]} : vector<8x256xf32> to vector<8x64xf32>
    %218 = vector.extract_strided_slice %216 {offsets = [0, 64], sizes = [8, 64], strides = [1, 1]} : vector<8x256xf32> to vector<8x64xf32>
    %219 = vector.extract_strided_slice %216 {offsets = [0, 128], sizes = [8, 64], strides = [1, 1]} : vector<8x256xf32> to vector<8x64xf32>
    %220 = vector.extract_strided_slice %216 {offsets = [0, 192], sizes = [8, 64], strides = [1, 1]} : vector<8x256xf32> to vector<8x64xf32>
    %221 = arith.mulf %218, %199 : vector<8x64xf32>
    %222 = arith.mulf %217, %219 : vector<8x64xf32>
    %223 = arith.addf %221, %222 : vector<8x64xf32>
    %224 = math.tanh %223 : vector<8x64xf32>
    %225 = arith.mulf %220, %224 : vector<8x64xf32>
    %c8_i32 = arith.constant 8 : i32
    %c0_49 = arith.constant 0 : index
    %c0_50 = arith.constant 0 : index
    %226 = vector.load %arg7[%c0_49, %c0_50] : memref<8x64xf32, #tpu.memory_space<vmem>>, vector<8x64xf32>
    tpu.vector_store %arg7[%c0_49, %c0_50], %225 {strides = array<i32>} : memref<8x64xf32, #tpu.memory_space<vmem>>, vector<8x64xf32>,
    return
  }
  func.func @transform_0(%arg0: i32) -> (i32, i32, i32) {
    %c0_i32 = arith.constant 0 : i32
    %c0_i32_0 = arith.constant 0 : i32
    %c0_i32_1 = arith.constant 0 : i32
    return %c0_i32, %arg0, %c0_i32_0 : i32, i32, i32
  }
  func.func @transform_1(%arg0: i32) -> (i32, i32) {
    %c0_i32 = arith.constant 0 : i32
    %c0_i32_0 = arith.constant 0 : i32
    %c0_i32_1 = arith.constant 0 : i32
    return %c0_i32, %c0_i32_0 : i32, i32
  }
  func.func @transform_2(%arg0: i32) -> (i32, i32) {
    %c0_i32 = arith.constant 0 : i32
    %c0_i32_0 = arith.constant 0 : i32
    %c0_i32_1 = arith.constant 0 : i32
    return %c0_i32, %c0_i32_0 : i32, i32
  }
  func.func @transform_3(%arg0: i32) -> (i32, i32) {
    %c0_i32 = arith.constant 0 : i32
    %c0_i32_0 = arith.constant 0 : i32
    %c0_i32_1 = arith.constant 0 : i32
    return %c0_i32, %c0_i32_0 : i32, i32
  }
  func.func @transform_4(%arg0: i32) -> (i32, i32) {
    %c0_i32 = arith.constant 0 : i32
    %c0_i32_0 = arith.constant 0 : i32
    %c0_i32_1 = arith.constant 0 : i32
    return %c0_i32, %c0_i32_0 : i32, i32
  }
  func.func @transform_5(%arg0: i32) -> (i32, i32) {
    %c0_i32 = arith.constant 0 : i32
    %c0_i32_0 = arith.constant 0 : i32
    %c0_i32_1 = arith.constant 0 : i32
    return %c0_i32, %c0_i32_0 : i32, i32
  }
  func.func @transform_6(%arg0: i32) -> (i32, i32) {
    %c0_i32 = arith.constant 0 : i32
    %c0_i32_0 = arith.constant 0 : i32
    return %arg0, %c0_i32 : i32, i32
  }
}

</mosaic_0001>

<bundles_post_ra>
// kernel: tpu_custom_call.1
= control target key start
LH: loop header
LB: loop body
LE: loop exit
PB: predicated region body
PF: predicated region fallthrough
CT: control target
= control target key end

     0   :  { %11 = vsyncpa [#allocation4], 0  ;;  %s1619_s0 = inlined_call_operand.vmem [shape: f32[8,8,2], index: 0, kind: input, shape index: {}]   ;;  %s1620_s1 = inlined_call_operand.vmem [shape: f32[2,64], index: 1, kind: input, shape index: {}]   ;;  %s1621_s2 = inlined_call_operand.vmem [shape: f32[1,64], index: 2, kind: input, shape index: {}]   ;;  %s1622_s3 = inlined_call_operand.vmem [shape: bf16[64,256], index: 3, kind: input, shape index: {}]   ;;  %s1623_s4 = inlined_call_operand.vmem [shape: f32[1,256], index: 4, kind: input, shape index: {}]   ;;  %s1624_s5 = inlined_call_operand.hbm [shape: bf16[64,256], index: 5, kind: input, shape index: {}]   ;;  %s1625_s6 = inlined_call_operand.hbm [shape: f32[8,64], index: 6, kind: output, shape index: {}]  }
   0x1   :  { %12 = vsyncpa [#allocation5], 0  ;;  %s1263_s21 = smov [#allocation3]   ;;  %s1215_s25 = scalar_lea.hbm %s1624_s5, 1024 }
   0x2   :  { %s28_s22 = sshll.u32 %s1263_s21, 4  ;;  %p1216_p0 = scmp.ne.s32.totalorder %s1624_s5, %s1215_s25  ;;  %s29_s22 = int_to_ptr.vmem [resolvable:$true] %s28_s22 }
   0x3   :  { %p1219_p1 = scmp.lt.u32.totalorder %s1215_s25, %s1624_s5 }
   0x5   :  { %p1221_p2 = pnand %p1219_p1, %p1216_p0 }
   0x7   :  { %1224 = shalt.err (!%p1221_p2)
}
   0x8   :  { %s1225_s30 = scalar_lea.vmem %s29_s22, 1024  ;;  %p1230_p4 = scmp.lt.s32.totalorder %s29_s22, %s29_s22 }
   0x9   :  { %p1226_p3 = scmp.ne.s32.totalorder %s29_s22, %s1225_s30  ;;  %p1231_p5 = scmp.lt.s32.totalorder %s1225_s30, %s1225_s30 }
   0xb   :  { %p1232_p6 = por %p1231_p5, %p1230_p4 }
   0xd   :  { %p1233_p7 = pnand %p1232_p6, %p1226_p3 }
   0xf   :  { %1236 = shalt.err (!%p1233_p7)
}
  0x10   :  { %s1264_s7 = smov 128   ;;  %s1265_s8 = smov 8  }
  0x11   :  { %34 = dma.hbm_to_vmem [thread:$0]  %s1624_s5, 1024, %s29_s22, [#allocation4], %s1264_s7, %s1264_s7, %s1265_s8  }
  0x12   :  { %1259 = dma.done.wait [#allocation4], 1024  }
  0x13   :  { %1260 = vsyncadd [#allocation4], 4294966272  ;;  %v1266_v0 = vmov 1   ;;  %v1267_v1 = vmov 0   ;;  %v39_v2 = vld [vmem:[%s1619_s0] sm:$0xff]  ;;  %v40_v3 = vld [vmem:[%s1619_s0 + $0x8] sm:$0xff]  ;;  %v88_v20 = vlaneseq }
  0x14   :  { %1085 = vset.pattern.permute.xlu1 %v1266_v0  ;;  %1084 = vset.pattern.permute.xlu0 %v1267_v1  ;;  %v1327_v4 = vld [vmem:[#allocation3 + $0x4] ss:$8 sps:$4 sm:$0xff]   ;;  %v1332_v6 = vld [vmem:[#allocation3] ss:$8 sps:$4 sm:$0xff]   ;;  %v1339_v8 = vld [vmem:[#allocation3 + $0x14] ss:$8 sps:$4 sm:$0xff]  }
  0x15   :  { %427 = vmatprep.mubr.bf16.mxu1 %v1267_v1  ;;  %276 = vmatprep.mubr.bf16.mxu0 %v1267_v1  ;;  %v1097_v5 = vld [vmem:[%s1622_s3 + $0x4] ss:$8 sps:$4 sm:$0xff]   ;;  %v1100_v7 = vld [vmem:[%s1622_s3] ss:$8 sps:$4 sm:$0xff]   ;;  %v1103_v9 = vld [vmem:[%s1622_s3 + $0x14] ss:$8 sps:$4 sm:$0xff]  }
  0x16   :  { %101 = vperm.xlu1 %1085, %v39_v2   ;;  %50 = vperm.xlu0 %1084, %v39_v2   ;;  %v1345_v10 = vld [vmem:[#allocation3 + $0x10] ss:$8 sps:$4 sm:$0xff]   ;;  %v1350_v12 = vld [vmem:[#allocation3 + $0x24] ss:$8 sps:$4 sm:$0xff]   ;;  %v1356_v14 = vld [vmem:[#allocation3 + $0x20] ss:$8 sps:$4 sm:$0xff]  }
  0x17   :  { %395 = vmatprep.subr.bf16.mxu1 %v1327_v4  ;;  %244 = vmatprep.subr.bf16.mxu0 %v1097_v5  ;;  %v1106_v11 = vld [vmem:[%s1622_s3 + $0x10] ss:$8 sps:$4 sm:$0xff]   ;;  %v1109_v13 = vld [vmem:[%s1622_s3 + $0x24] ss:$8 sps:$4 sm:$0xff]   ;;  %v1112_v15 = vld [vmem:[%s1622_s3 + $0x20] ss:$8 sps:$4 sm:$0xff]  }
  0x18   :  { %396 = vmatpush1.bf16.msra.mxu1 %v1332_v6  ;;  %245 = vmatpush1.bf16.msra.mxu0 %v1100_v7  ;;  %v1363_v16 = vld [vmem:[#allocation3 + $0x34] ss:$8 sps:$4 sm:$0xff]   ;;  %v1369_v18 = vld [vmem:[#allocation3 + $0x30] ss:$8 sps:$4 sm:$0xff]   ;;  %v89_v21 = vshrl.u32 %v88_v20, 7  ;;  %vm231_vm0 = vcmask 523264  }
  0x19   :  { %397 = vmatprep.subr.bf16.mxu1 %v1339_v8  ;;  %246 = vmatprep.subr.bf16.mxu0 %v1103_v9  ;;  %v1115_v17 = vld [vmem:[%s1622_s3 + $0x34] ss:$8 sps:$4 sm:$0xff]   ;;  %v1118_v19 = vld [vmem:[%s1622_s3 + $0x30] ss:$8 sps:$4 sm:$0xff]   ;;  %v47_v24 = vld [vmem:[%s1620_s1] sm:$0x3] }
  0x1a   :  { %105 = vperm.xlu1 %1085, %v40_v3   ;;  %55 = vperm.xlu0 %1084, %v40_v3   ;;  %v134_v22 = vsub.s32 1, %v89_v21  ;;  %v90_v23 = vsub.s32 0, %v89_v21  ;;  %v1402_v36 = vld [vmem:[%s1621_s2] ss:$0 sm:$0xff]  ;;  %v342_v62 = vand.u32 127, %v88_v20 }
  0x1b   :  { %v179_v45 = vld [vmem:[%s1623_s4] sm:$0x3]  ;;  %s1268_s4 = smov 64  }
  0x1c   :  { %398 = vmatpush1.bf16.msra.mxu1 %v1345_v10  ;;  %247 = vmatpush1.bf16.msra.mxu0 %v1106_v11  ;;  %v1391_v25 = vrot.slane %v47_v24, %v134_v22  ;;  %v1393_v26 = vrot.slane %v47_v24, %v90_v23  ;;  %v1419_v46 = vrot.slane %v179_v45, %v90_v23  ;;  %v1425_v63 = vadd.s32 128, %v342_v62  ;;  %v43_v23 = vld [vmem:[%s1619_s0 + $0x20] sm:$0xff]  ;;  %v44_v24 = vld [vmem:[%s1619_s0 + $0x28] sm:$0xff] }
  0x1d   :  { %399 = vmatprep.subr.bf16.mxu1 %v1350_v12  ;;  %248 = vmatprep.subr.bf16.mxu0 %v1109_v13  ;;  %v1421_v47 = vrot.slane %v179_v45, %v134_v22  ;;  %v41_v22 = vld [vmem:[%s1619_s0 + $0x10] sm:$0xff] }
  0x1e   :  { %1086 = vset.pattern.permute.xlu1 %v1267_v1  ;;  %vm347_vm1 = vcmp.lt.s32.totalorder %v1425_v63, 192 }
  0x20   :  { %400 = vmatpush1.bf16.msra.mxu1 %v1356_v14  ;;  %249 = vmatpush1.bf16.msra.mxu0 %v1112_v15 }
  0x21   :  { %401 = vmatprep.subr.bf16.mxu1 %v1363_v16  ;;  %250 = vmatprep.subr.bf16.mxu0 %v1115_v17 }
  0x24   :  { %402 = vmatpush1.bf16.msra.mxu1 %v1369_v18  ;;  %251 = vmatpush1.bf16.msra.mxu0 %v1118_v19 }
  0x25   :  { %477 = vmatprep.subr.bf16.mxu1 %v1327_v4  ;;  %555 = vmatprep.subr.bf16.mxu0 %v1327_v4 }
  0x27   :  { %428 = vmatmul.mubr.bf16.vlgmr.msra.gmra.mrb[0].mxu1 %v1267_v1 }
  0x28   :  { %478 = vmatpush1.bf16.msra.mxu1 %v1332_v6  ;;  %509 = vmatprep.mubr.bf16.mxu1 %v1267_v1 }
  0x29   :  { %479 = vmatprep.subr.bf16.mxu1 %v1339_v8 }
  0x2c   :  { %480 = vmatpush1.bf16.msra.mxu1 %v1345_v10 }
  0x2d   :  { %481 = vmatprep.subr.bf16.mxu1 %v1350_v12 }
  0x30   :  { %482 = vmatpush1.bf16.msra.mxu1 %v1356_v14 }
  0x31   :  { %483 = vmatprep.subr.bf16.mxu1 %v1363_v16 }
  0x34   :  { %484 = vmatpush1.bf16.msra.mxu1 %v1369_v18 }
  0x35   :  { %633 = vmatprep.subr.bf16.mxu1 %v1327_v4 }
  0x95   :  { %v102_v27 = vpop.permute.xlu1 %101  ;;  %v51_v28 = vpop.permute.xlu0 %50 }
  0x96   :  { %v136_v29 = vmul.f32 %v1391_v25, %v102_v27  ;;  %v92_v30 = vmul.f32 %v1393_v26, %v51_v28  ;;  %v46_v27 = vld [vmem:[%s1619_s0 + $0x38] sm:$0xff]  ;;  %v45_v28 = vld [vmem:[%s1619_s0 + $0x30] sm:$0xff] }
  0x98   :  { %v144_v33 = vadd.f32 %v136_v29, %v92_v30 }
  0x99   :  { %v106_v31 = vpop.permute.xlu1 %105  ;;  %v56_v32 = vpop.permute.xlu0 %55 }
  0x9a   :  { %v137_v34 = vmul.f32 %v1391_v25, %v106_v31  ;;  %v93_v35 = vmul.f32 %v1393_v26, %v56_v32  ;;  %v159_v38 = vadd.f32 %v1402_v36, %v144_v33 }
  0x9c   :  { %v145_v37 = vadd.f32 %v137_v34, %v93_v35 }
  0x9e   :  { %v160_v39 = vadd.f32 %v1402_v36, %v145_v37 }
  0xa0   :  { %v167_v40 = vpack.c.bf16 %v160_v39, %v159_v38 }
  0xa2   :  { %1042 = vmatmul.mubr.msk.bf16.vlgmr.msra.gmra.mrb[0].mxu0 %vm231_vm0, %v167_v40 }
  0xa3   :  { %286 = vmatprep.mubr.bf16.mxu0 %v1267_v1  ;;  %556 = vmatpush1.bf16.msra.mxu0 %v1332_v6 }
  0xa4   :  { %557 = vmatprep.subr.bf16.mxu0 %v1339_v8 }
  0xa7   :  { %558 = vmatpush1.bf16.msra.mxu0 %v1345_v10 }
  0xa8   :  { %559 = vmatprep.subr.bf16.mxu0 %v1350_v12 }
  0xab   :  { %560 = vmatpush1.bf16.msra.mxu0 %v1356_v14 }
  0xac   :  { %561 = vmatprep.subr.bf16.mxu0 %v1363_v16 }
  0xaf   :  { %562 = vmatpush1.bf16.msra.mxu0 %v1369_v18 }
  0xb0   :  { %711 = vmatprep.subr.bf16.mxu0 %v1327_v4 }
  0xfa   :  { %v429_v41 = vpop.f32.mrb[0].mxu1 }
  0xfb   :  { %v431_v42 = vpop.f32.mrb[1].mxu1 }
  0xfc   :  { %v433_v43 = vpop.f32.mrb[2].mxu1 }
  0xfd   :  { %v434_v44 = vpop.f32.mrb[3].mxu1 }
 0x175   :  { %v278_v48 = vpop.f32.mrb[0].mxu0 }
 0x176   :  { %v279_v49 = vadd.f32 %v278_v48, %v1419_v46  ;;  %v280_v50 = vpop.f32.mrb[1].mxu0 }
 0x177   :  { %v281_v51 = vadd.f32 %v280_v50, %v1421_v47  ;;  %v282_v52 = vpop.f32.mrb[2].mxu0 }
 0x178   :  { %v436_v53 = vadd.f32 %v429_v41, %v279_v49  ;;  %v284_v54 = vpop.f32.mrb[3].mxu0  ;;  %v283_v29 = vadd.f32 %v282_v52, %v1419_v46 }
 0x179   :  { %v437_v55 = vadd.f32 %v431_v42, %v281_v51  ;;  %v285_v30 = vadd.f32 %v284_v54, %v1421_v47  ;;  %v42_v51 = vld [vmem:[%s1619_s0 + $0x18] sm:$0xff]  ;;  %s1269_s0 = smov [#allocation6]  }
 0x17a   :  { %v1054_v56 = vmul.f32 -1.442695, %v436_v53  ;;  %s1024_s20 = sshll.u32 %s1269_s0, 4  ;;  %s1025_s20 = int_to_ptr.vmem [resolvable:$true] %s1024_s20 }
 0x17b   :  { %v1055_v57 = vmul.f32 -1.442695, %v437_v55  ;;  %s1237_s21 = scalar_lea.vmem %s1025_s20, 128  ;;  %p1242_p9 = scmp.lt.s32.totalorder %s1025_s20, %s1025_s20 }
 0x17c   :  { %1119 = vpow2.f32 %v1054_v56  ;;  %p1238_p8 = scmp.ne.s32.totalorder %s1025_s20, %s1237_s21  ;;  %p1243_p10 = scmp.lt.s32.totalorder %s1237_s21, %s1237_s21 }
 0x17d   :  { %1121 = vpow2.f32 %v1055_v57 }
 0x17e   :  { %1123 = vtanh.f32 %v437_v55  ;;  %p1244_p11 = por %p1243_p10, %p1242_p9 }
 0x180   :  { %p1245_p12 = pnand %p1244_p11, %p1238_p8 }
 0x186   :  { %v1120_v58 = vpop.eup %1119 }
 0x187   :  { %v1122_v59 = vpop.eup %1121  ;;  %v446_v60 = vadd.f32 1.0, %v1120_v58 }
 0x188   :  { %v447_v61 = vadd.f32 1.0, %v1122_v59  ;;  %v1124_v2 = vpop.eup %1123 }
 0x18a   :  { %1125 = vrcp.f32 %v447_v61 }
 0x18b   :  { %1127 = vrcp.f32 %v446_v60 }
 0x194   :  { %v1126_v3 = vpop.eup %1125 }
 0x195   :  { %v1128_v5 = vpop.eup %1127  ;;  %v457_v7 = vsel %vm347_vm1, %v1124_v2, %v1126_v3 }
 0x196   :  { %v459_v9 = vmul.f32 %v1128_v5, %v457_v7  ;;  %v458_v11 = vmul.f32 0.0, %v1128_v5 }
 0x198   :  { %461 = vrot.lane.b32.xlu0 %v459_v9, %s1268_s4 }
 0x20a   :  { %v462_v13 = vpop.permute.xlu0 %461 }
 0x20b   :  { %v1431_v15 = vadd.f32 %v462_v13, %v458_v11 }
 0x20d   :  { %1129 = vtanh.f32 %v1431_v15 }
 0x217   :  { %v1130_v17 = vpop.eup %1129 }
 0x218   :  { %v466_v19 = vmul.f32 %v1130_v17, %v457_v7 }
 0x21a   :  { %v470_v20 = vpack.c.bf16 %v466_v19, %v466_v19 }
 0x21c   :  { %472 = vrot.lane.b32.xlu1 %v470_v20, %s1268_s4 }
 0x220   :  { %60 = vperm.xlu1 %1086, %v41_v22  }
 0x224   :  { %1087 = vset.pattern.permute.xlu1 %v1266_v0 }
 0x225   :  { %109 = vperm.xlu1 %1087, %v41_v22  }
 0x229   :  { %1089 = vset.pattern.permute.xlu1 %v1267_v1 }
 0x22a   :  { %70 = vperm.xlu1 %1089, %v43_v23  }
 0x22e   :  { %75 = vperm.xlu1 %1089, %v44_v24  }
 0x232   :  { %1090 = vset.pattern.permute.xlu1 %v1266_v0 }
 0x233   :  { %121 = vperm.xlu1 %1090, %v44_v24  }
 0x237   :  { %1092 = vset.pattern.permute.xlu1 %v1267_v1 }
 0x238   :  { %85 = vperm.xlu1 %1092, %v46_v27  }
 0x23c   :  { %1093 = vset.pattern.permute.xlu1 %v1266_v0 }
 0x23d   :  { %125 = vperm.xlu1 %1093, %v45_v28  }
 0x28e   :  { %v473_v21 = vpop.permute.xlu1 %472 }
 0x28f   :  { %1056 = vmatmul.mubr.msk.bf16.vlgmr.msra.gmra.mrb[4].mxu1 %vm231_vm0, %v473_v21 }
 0x290   :  { %634 = vmatpush1.bf16.msra.mxu1 %v1332_v6  ;;  %665 = vmatprep.mubr.bf16.mxu1 %v1267_v1 }
 0x291   :  { %635 = vmatprep.subr.bf16.mxu1 %v1339_v8 }
 0x294   :  { %636 = vmatpush1.bf16.msra.mxu1 %v1345_v10 }
 0x295   :  { %637 = vmatprep.subr.bf16.mxu1 %v1350_v12 }
 0x298   :  { %638 = vmatpush1.bf16.msra.mxu1 %v1356_v14 }
 0x299   :  { %639 = vmatprep.subr.bf16.mxu1 %v1363_v16 }
 0x29c   :  { %640 = vmatpush1.bf16.msra.mxu1 %v1369_v18 }
 0x29d   :  { %789 = vmatprep.subr.bf16.mxu1 %v1327_v4 }
 0x29f   :  { %v61_v52 = vpop.permute.xlu1 %60 }
 0x2a0   :  { %v94_v2 = vmul.f32 %v1393_v26, %v61_v52 }
 0x2a4   :  { %v110_v56 = vpop.permute.xlu1 %109 }
 0x2a9   :  { %v71_v57 = vpop.permute.xlu1 %70 }
 0x2aa   :  { %v96_v21 = vmul.f32 %v1393_v26, %v71_v57 }
 0x2ad   :  { %v76_v58 = vpop.permute.xlu1 %75 }
 0x2b2   :  { %v122_v3 = vpop.permute.xlu1 %121 }
 0x2b3   :  { %v141_v17 = vmul.f32 %v1391_v25, %v122_v3 }
 0x2b7   :  { %v86_v9 = vpop.permute.xlu1 %85 }
 0x362   :  { %v511_v31 = vpop.f32.mrb[4].mxu1 }
 0x363   :  { %v518_v32 = vadd.f32 %v511_v31, %v283_v29  ;;  %v513_v33 = vpop.f32.mrb[5].mxu1 }
 0x364   :  { %v519_v34 = vadd.f32 %v513_v33, %v285_v30  ;;  %v515_v35 = vpop.f32.mrb[6].mxu1 }
 0x365   :  { %v1057_v37 = vmul.f32 -1.442695, %v518_v32  ;;  %v516_v38 = vpop.f32.mrb[7].mxu1 }
 0x366   :  { %v1058_v39 = vmul.f32 -1.442695, %v519_v34  ;;  %v99_v38 = vmul.f32 %v1393_v26, %v86_v9 }
 0x367   :  { %1131 = vpow2.f32 %v1057_v37 }
 0x368   :  { %1133 = vpow2.f32 %v1058_v39 }
 0x369   :  { %1135 = vtanh.f32 %v519_v34 }
 0x371   :  { %v1132_v40 = vpop.eup %1131 }
 0x372   :  { %v1134_v41 = vpop.eup %1133  ;;  %v528_v42 = vadd.f32 1.0, %v1132_v40 }
 0x373   :  { %v529_v43 = vadd.f32 1.0, %v1134_v41  ;;  %v1136_v44 = vpop.eup %1135 }
 0x375   :  { %1137 = vrcp.f32 %v529_v43 }
 0x376   :  { %1139 = vrcp.f32 %v528_v42 }
 0x37f   :  { %v1138_v45 = vpop.eup %1137 }
 0x380   :  { %v1140_v48 = vpop.eup %1139  ;;  %v535_v49 = vsel %vm347_vm1, %v1136_v44, %v1138_v45 }
 0x381   :  { %v537_v50 = vmul.f32 %v1140_v48, %v535_v49  ;;  %v536_v53 = vmul.f32 %v1140_v48, %v1431_v15  ;;  %v97_v15 = vmul.f32 %v1393_v26, %v76_v58 }
 0x383   :  { %539 = vrot.lane.b32.xlu0 %v537_v50, %s1268_s4 }
 0x387   :  { %65 = vperm.xlu0 %1084, %v42_v51  }
 0x38b   :  { %1088 = vset.pattern.permute.xlu0 %v1266_v0 }
 0x38c   :  { %113 = vperm.xlu0 %1088, %v42_v51  }
 0x390   :  { %117 = vperm.xlu0 %1088, %v43_v23  }
 0x394   :  { %1091 = vset.pattern.permute.xlu0 %v1267_v1 }
 0x395   :  { %80 = vperm.xlu0 %1091, %v45_v28   ;;  %v126_v28 = vpop.permute.xlu1 %125 }
 0x396   :  { %v142_v34 = vmul.f32 %v1391_v25, %v126_v28 }
 0x399   :  { %1094 = vset.pattern.permute.xlu0 %v1266_v0  ;;  %v138_v0 = vmul.f32 %v1391_v25, %v110_v56 }
 0x39a   :  { %129 = vperm.xlu0 %1094, %v46_v27   ;;  %v149_v27 = vadd.f32 %v141_v17, %v97_v15 }
 0x39b   :  { %v146_v5 = vadd.f32 %v138_v0, %v94_v2 }
 0x39c   :  { %v164_v32 = vadd.f32 %v1402_v36, %v149_v27 }
 0x39d   :  { %v161_v20 = vadd.f32 %v1402_v36, %v146_v5 }
 0x3f5   :  { %v540_v54 = vpop.permute.xlu0 %539 }
 0x3f6   :  { %v1477_v55 = vadd.f32 %v540_v54, %v536_v53 }
 0x3f8   :  { %1141 = vtanh.f32 %v1477_v55 }
 0x402   :  { %v1142_v59 = vpop.eup %1141 }
 0x403   :  { %v544_v60 = vmul.f32 %v1142_v59, %v535_v49 }
 0x405   :  { %v548_v61 = vpack.c.bf16 %v544_v60, %v544_v60 }
 0x406   :  { %v66_v62 = vpop.permute.xlu0 %65 }
 0x407   :  { %550 = vrot.lane.b32.xlu1 %v548_v61, %s1268_s4  ;;  %v95_v11 = vmul.f32 %v1393_v26, %v66_v62 }
 0x40b   :  { %v114_v7 = vpop.permute.xlu0 %113 }
 0x40c   :  { %v139_v13 = vmul.f32 %v1391_v25, %v114_v7 }
 0x40e   :  { %v147_v19 = vadd.f32 %v139_v13, %v95_v11 }
 0x40f   :  { %v118_v22 = vpop.permute.xlu0 %117 }
 0x410   :  { %v162_v23 = vadd.f32 %v1402_v36, %v147_v19  ;;  %v140_v24 = vmul.f32 %v1391_v25, %v118_v22 }
 0x412   :  { %v168_v29 = vpack.c.bf16 %v162_v23, %v161_v20  ;;  %v148_v30 = vadd.f32 %v140_v24, %v96_v21 }
 0x414   :  { %1043 = vmatmul.mubr.msk.bf16.gmra.mrb[4].mxu0 %vm231_vm0, %v168_v29  ;;  %v163_v31 = vadd.f32 %v1402_v36, %v148_v30  ;;  %v81_v33 = vpop.permute.xlu0 %80 }
 0x415   :  { %296 = vmatprep.mubr.bf16.mxu0 %v1267_v1  ;;  %v98_v35 = vmul.f32 %v1393_v26, %v81_v33 }
 0x416   :  { %v169_v37 = vpack.c.bf16 %v164_v32, %v163_v31 }
 0x417   :  { %v150_v39 = vadd.f32 %v142_v34, %v98_v35 }
 0x419   :  { %v130_v40 = vpop.permute.xlu0 %129  ;;  %v165_v43 = vadd.f32 %v1402_v36, %v150_v39 }
 0x41a   :  { %v143_v41 = vmul.f32 %v1391_v25, %v130_v40 }
 0x41c   :  { %1044 = vmatmul.mubr.msk.bf16.gmra.mrb[8].mxu0 %vm231_vm0, %v169_v37  ;;  %v151_v42 = vadd.f32 %v143_v41, %v99_v38 }
 0x41d   :  { %306 = vmatprep.mubr.bf16.mxu0 %v1267_v1 }
 0x41e   :  { %v166_v44 = vadd.f32 %v1402_v36, %v151_v42 }
 0x420   :  { %v170_v45 = vpack.c.bf16 %v166_v44, %v165_v43 }
 0x424   :  { %1045 = vmatmul.mubr.msk.bf16.gmra.mrb[12].mxu0 %vm231_vm0, %v170_v45 }
 0x425   :  { %587 = vmatprep.mubr.bf16.mxu0 %v1267_v1 }
 0x479   :  { %v551_v48 = vpop.permute.xlu1 %550 }
 0x47a   :  { %1059 = vmatmul.mubr.msk.bf16.vlgmr.msra.gmra.mrb[16].mxu0 %vm231_vm0, %v551_v48 }
 0x47b   :  { %712 = vmatpush1.bf16.msra.mxu0 %v1332_v6  ;;  %743 = vmatprep.mubr.bf16.mxu0 %v1267_v1 }
 0x47c   :  { %713 = vmatprep.subr.bf16.mxu0 %v1339_v8 }
 0x47f   :  { %714 = vmatpush1.bf16.msra.mxu0 %v1345_v10 }
 0x480   :  { %715 = vmatprep.subr.bf16.mxu0 %v1350_v12 }
 0x483   :  { %716 = vmatpush1.bf16.msra.mxu0 %v1356_v14 }
 0x484   :  { %717 = vmatprep.subr.bf16.mxu0 %v1363_v16 }
 0x487   :  { %718 = vmatpush1.bf16.msra.mxu0 %v1369_v18 }
 0x488   :  { %867 = vmatprep.subr.bf16.mxu0 %v1327_v4 }
 0x4e7   :  { %v288_v25 = vpop.f32.mrb[4].mxu0 }
 0x4e8   :  { %v290_v26 = vpop.f32.mrb[5].mxu0  ;;  %v289_v59 = vadd.f32 %v288_v25, %v1419_v46 }
 0x4e9   :  { %v292_v36 = vpop.f32.mrb[6].mxu0  ;;  %v291_v60 = vadd.f32 %v290_v26, %v1421_v47 }
 0x4ea   :  { %v294_v49 = vpop.f32.mrb[7].mxu0 }
 0x4eb   :  { %v295_v33 = vadd.f32 %v294_v49, %v1421_v47 }
 0x4ef   :  { %v1515_v50 = vpop.f32.mrb[8].mxu0 }
 0x4f0   :  { %v1517_v51 = vpop.f32.mrb[9].mxu0 }
 0x4f1   :  { %v1519_v52 = vpop.f32.mrb[10].mxu0 }
 0x4f2   :  { %v1521_v53 = vpop.f32.mrb[11].mxu0 }
 0x4f7   :  { %v1523_v54 = vpop.f32.mrb[12].mxu0 }
 0x4f8   :  { %v1525_v56 = vpop.f32.mrb[13].mxu0 }
 0x4f9   :  { %v1527_v57 = vpop.f32.mrb[14].mxu0 }
 0x4fa   :  { %v1529_v58 = vpop.f32.mrb[15].mxu0 }
 0x54d   :  { %v589_v61 = vpop.f32.mrb[16].mxu0 }
 0x54e   :  { %v596_v62 = vadd.f32 %v589_v61, %v289_v59  ;;  %v591_v2 = vpop.f32.mrb[17].mxu0 }
 0x54f   :  { %v597_v0 = vadd.f32 %v591_v2, %v291_v60  ;;  %v593_v3 = vpop.f32.mrb[18].mxu0 }
 0x550   :  { %v1060_v5 = vmul.f32 -1.442695, %v596_v62  ;;  %v594_v7 = vpop.f32.mrb[19].mxu0 }
 0x551   :  { %v1061_v9 = vmul.f32 -1.442695, %v597_v0  ;;  %v301_v7 = vadd.f32 %v1517_v51, %v1421_v47 }
 0x552   :  { %1143 = vpow2.f32 %v1060_v5  ;;  %v299_v5 = vadd.f32 %v1515_v50, %v1419_v46 }
 0x553   :  { %1145 = vpow2.f32 %v1061_v9 }
 0x554   :  { %1147 = vtanh.f32 %v597_v0 }
 0x55c   :  { %v1144_v11 = vpop.eup %1143 }
 0x55d   :  { %v1146_v13 = vpop.eup %1145  ;;  %v606_v15 = vadd.f32 1.0, %v1144_v11 }
 0x55e   :  { %v607_v17 = vadd.f32 1.0, %v1146_v13  ;;  %v1148_v19 = vpop.eup %1147 }
 0x560   :  { %1149 = vrcp.f32 %v607_v17 }
 0x561   :  { %1151 = vrcp.f32 %v606_v15 }
 0x56a   :  { %v1150_v20 = vpop.eup %1149 }
 0x56b   :  { %v1152_v21 = vpop.eup %1151  ;;  %v613_v22 = vsel %vm347_vm1, %v1148_v19, %v1150_v20 }
 0x56c   :  { %v615_v23 = vmul.f32 %v1152_v21, %v613_v22  ;;  %v614_v24 = vmul.f32 %v1152_v21, %v1477_v55  ;;  %v293_v55 = vadd.f32 %v292_v36, %v1419_v46 }
 0x56e   :  { %617 = vrot.lane.b32.xlu1 %v615_v23, %s1268_s4 }
 0x5e0   :  { %v618_v27 = vpop.permute.xlu1 %617 }
 0x5e1   :  { %v620_v28 = vadd.f32 %v618_v27, %v614_v24 }
 0x5e3   :  { %1153 = vtanh.f32 %v620_v28 }
 0x5ed   :  { %v1154_v29 = vpop.eup %1153 }
 0x5ee   :  { %v622_v30 = vmul.f32 %v1154_v29, %v613_v22 }
 0x5f0   :  { %v626_v31 = vpack.c.bf16 %v622_v30, %v622_v30 }
 0x5f2   :  { %628 = vrot.lane.b32.xlu0 %v626_v31, %s1268_s4 }
 0x664   :  { %v629_v32 = vpop.permute.xlu0 %628 }
 0x665   :  { %1062 = vmatmul.mubr.msk.bf16.vlgmr.msra.gmra.mrb[8].mxu1 %vm231_vm0, %v629_v32 }
 0x666   :  { %790 = vmatpush1.bf16.msra.mxu1 %v1332_v6  ;;  %821 = vmatprep.mubr.bf16.mxu1 %v1267_v1 }
 0x667   :  { %791 = vmatprep.subr.bf16.mxu1 %v1339_v8 }
 0x66a   :  { %792 = vmatpush1.bf16.msra.mxu1 %v1345_v10 }
 0x66b   :  { %793 = vmatprep.subr.bf16.mxu1 %v1350_v12 }
 0x66e   :  { %794 = vmatpush1.bf16.msra.mxu1 %v1356_v14 }
 0x66f   :  { %795 = vmatprep.subr.bf16.mxu1 %v1363_v16 }
 0x672   :  { %796 = vmatpush1.bf16.msra.mxu1 %v1369_v18 }
 0x673   :  { %945 = vmatprep.subr.bf16.mxu1 %v1327_v4 }
 0x738   :  { %v667_v34 = vpop.f32.mrb[8].mxu1 }
 0x739   :  { %v674_v35 = vadd.f32 %v667_v34, %v293_v55  ;;  %v669_v37 = vpop.f32.mrb[9].mxu1 }
 0x73a   :  { %v675_v38 = vadd.f32 %v669_v37, %v295_v33  ;;  %v671_v39 = vpop.f32.mrb[10].mxu1 }
 0x73b   :  { %v1063_v40 = vmul.f32 -1.442695, %v674_v35  ;;  %v672_v41 = vpop.f32.mrb[11].mxu1 }
 0x73c   :  { %v1064_v42 = vmul.f32 -1.442695, %v675_v38 }
 0x73d   :  { %1155 = vpow2.f32 %v1063_v40 }
 0x73e   :  { %1157 = vpow2.f32 %v1064_v42 }
 0x73f   :  { %1159 = vtanh.f32 %v675_v38  ;;  %v303_v38 = vadd.f32 %v1519_v52, %v1419_v46 }
 0x747   :  { %v1156_v43 = vpop.eup %1155 }
 0x748   :  { %v1158_v44 = vpop.eup %1157  ;;  %v684_v45 = vadd.f32 1.0, %v1156_v43 }
 0x749   :  { %v685_v48 = vadd.f32 1.0, %v1158_v44  ;;  %v1160_v4 = vpop.eup %1159 }
 0x74b   :  { %1161 = vrcp.f32 %v685_v48 }
 0x74c   :  { %1163 = vrcp.f32 %v684_v45 }
 0x755   :  { %v1162_v25 = vpop.eup %1161 }
 0x756   :  { %v1164_v26 = vpop.eup %1163  ;;  %v691_v36 = vsel %vm347_vm1, %v1160_v4, %v1162_v25 }
 0x757   :  { %v693_v49 = vmul.f32 %v1164_v26, %v691_v36  ;;  %v692_v59 = vmul.f32 %v1164_v26, %v620_v28 }
 0x759   :  { %695 = vrot.lane.b32.xlu1 %v693_v49, %s1268_s4 }
 0x7cb   :  { %v696_v60 = vpop.permute.xlu1 %695 }
 0x7cc   :  { %v698_v61 = vadd.f32 %v696_v60, %v692_v59 }
 0x7ce   :  { %1165 = vtanh.f32 %v698_v61 }
 0x7d8   :  { %v1166_v62 = vpop.eup %1165 }
 0x7d9   :  { %v700_v2 = vmul.f32 %v1166_v62, %v691_v36  ;;  %v311_v62 = vadd.f32 %v1525_v56, %v1421_v47 }
 0x7db   :  { %v704_v0 = vpack.c.bf16 %v700_v2, %v700_v2 }
 0x7dd   :  { %706 = vrot.lane.b32.xlu0 %v704_v0, %s1268_s4 }
 0x84f   :  { %v707_v3 = vpop.permute.xlu0 %706 }
 0x850   :  { %1065 = vmatmul.mubr.msk.bf16.vlgmr.msra.gmra.mrb[20].mxu0 %vm231_vm0, %v707_v3 }
 0x851   :  { %868 = vmatpush1.bf16.msra.mxu0 %v1332_v6  ;;  %899 = vmatprep.mubr.bf16.mxu0 %v1267_v1 }
 0x852   :  { %869 = vmatprep.subr.bf16.mxu0 %v1339_v8 }
 0x855   :  { %870 = vmatpush1.bf16.msra.mxu0 %v1345_v10 }
 0x856   :  { %871 = vmatprep.subr.bf16.mxu0 %v1350_v12 }
 0x859   :  { %872 = vmatpush1.bf16.msra.mxu0 %v1356_v14 }
 0x85a   :  { %873 = vmatprep.subr.bf16.mxu0 %v1363_v16 }
 0x85d   :  { %874 = vmatpush1.bf16.msra.mxu0 %v1369_v18 }
 0x923   :  { %v745_v9 = vpop.f32.mrb[20].mxu0 }
 0x924   :  { %v752_v11 = vadd.f32 %v745_v9, %v299_v5  ;;  %v747_v13 = vpop.f32.mrb[21].mxu0 }
 0x925   :  { %v753_v15 = vadd.f32 %v747_v13, %v301_v7  ;;  %v749_v17 = vpop.f32.mrb[22].mxu0 }
 0x926   :  { %v1066_v19 = vmul.f32 -1.442695, %v752_v11  ;;  %v750_v20 = vpop.f32.mrb[23].mxu0 }
 0x927   :  { %v1067_v21 = vmul.f32 -1.442695, %v753_v15 }
 0x928   :  { %1167 = vpow2.f32 %v1066_v19 }
 0x929   :  { %1169 = vpow2.f32 %v1067_v21 }
 0x92a   :  { %1171 = vtanh.f32 %v753_v15 }
 0x932   :  { %v1168_v22 = vpop.eup %1167 }
 0x933   :  { %v1170_v23 = vpop.eup %1169  ;;  %v762_v24 = vadd.f32 1.0, %v1168_v22 }
 0x934   :  { %v763_v27 = vadd.f32 1.0, %v1170_v23  ;;  %v1172_v50 = vpop.eup %1171 }
 0x936   :  { %1173 = vrcp.f32 %v763_v27 }
 0x937   :  { %1175 = vrcp.f32 %v762_v24 }
 0x940   :  { %v1174_v28 = vpop.eup %1173 }
 0x941   :  { %v1176_v51 = vpop.eup %1175  ;;  %v769_v29 = vsel %vm347_vm1, %v1172_v50, %v1174_v28 }
 0x942   :  { %v771_v30 = vmul.f32 %v1176_v51, %v769_v29  ;;  %v770_v31 = vmul.f32 %v1176_v51, %v698_v61  ;;  %v309_v61 = vadd.f32 %v1523_v54, %v1419_v46 }
 0x944   :  { %773 = vrot.lane.b32.xlu1 %v771_v30, %s1268_s4 }
 0x9b6   :  { %v774_v32 = vpop.permute.xlu1 %773 }
 0x9b7   :  { %v776_v55 = vadd.f32 %v774_v32, %v770_v31  ;;  %v313_v31 = vadd.f32 %v1527_v57, %v1419_v46  ;;  %v315_v32 = vadd.f32 %v1529_v58, %v1421_v47 }
 0x9b9   :  { %1177 = vtanh.f32 %v776_v55 }
 0x9c3   :  { %v1178_v33 = vpop.eup %1177 }
 0x9c4   :  { %v778_v34 = vmul.f32 %v1178_v33, %v769_v29 }
 0x9c6   :  { %v782_v35 = vpack.c.bf16 %v778_v34, %v778_v34 }
 0x9c8   :  { %784 = vrot.lane.b32.xlu0 %v782_v35, %s1268_s4 }
 0xa3a   :  { %v785_v37 = vpop.permute.xlu0 %784 }
 0xa3b   :  { %1068 = vmatmul.mubr.msk.bf16.vlgmr.msra.gmra.mrb[12].mxu1 %vm231_vm0, %v785_v37 }
 0xa3c   :  { %946 = vmatpush1.bf16.msra.mxu1 %v1332_v6  ;;  %977 = vmatprep.mubr.bf16.mxu1 %v1267_v1  ;;  %v305_v6 = vadd.f32 %v1521_v53, %v1421_v47 }
 0xa3d   :  { %947 = vmatprep.subr.bf16.mxu1 %v1339_v8 }
 0xa40   :  { %948 = vmatpush1.bf16.msra.mxu1 %v1345_v10 }
 0xa41   :  { %949 = vmatprep.subr.bf16.mxu1 %v1350_v12 }
 0xa44   :  { %950 = vmatpush1.bf16.msra.mxu1 %v1356_v14 }
 0xa45   :  { %951 = vmatprep.subr.bf16.mxu1 %v1363_v16 }
 0xa48   :  { %952 = vmatpush1.bf16.msra.mxu1 %v1369_v18 }
 0xb0e   :  { %v823_v39 = vpop.f32.mrb[12].mxu1 }
 0xb0f   :  { %v830_v1 = vadd.f32 %v823_v39, %v303_v38  ;;  %v825_v40 = vpop.f32.mrb[13].mxu1 }
 0xb10   :  { %v831_v8 = vadd.f32 %v825_v40, %v305_v6  ;;  %v827_v41 = vpop.f32.mrb[14].mxu1 }
 0xb11   :  { %v1069_v10 = vmul.f32 -1.442695, %v830_v1  ;;  %v828_v42 = vpop.f32.mrb[15].mxu1 }
 0xb12   :  { %v1070_v12 = vmul.f32 -1.442695, %v831_v8 }
 0xb13   :  { %1179 = vpow2.f32 %v1069_v10 }
 0xb14   :  { %1181 = vpow2.f32 %v1070_v12 }
 0xb15   :  { %1183 = vtanh.f32 %v831_v8 }
 0xb1d   :  { %v1180_v14 = vpop.eup %1179 }
 0xb1e   :  { %v1182_v16 = vpop.eup %1181  ;;  %v840_v43 = vadd.f32 1.0, %v1180_v14 }
 0xb1f   :  { %v841_v18 = vadd.f32 1.0, %v1182_v16  ;;  %v1184_v52 = vpop.eup %1183 }
 0xb21   :  { %1185 = vrcp.f32 %v841_v18 }
 0xb22   :  { %1187 = vrcp.f32 %v840_v43 }
 0xb2b   :  { %v1186_v44 = vpop.eup %1185 }
 0xb2c   :  { %v1188_v53 = vpop.eup %1187  ;;  %v847_v45 = vsel %vm347_vm1, %v1184_v52, %v1186_v44 }
 0xb2d   :  { %v849_v48 = vmul.f32 %v1188_v53, %v847_v45  ;;  %v848_v4 = vmul.f32 %v1188_v53, %v776_v55 }
 0xb2f   :  { %851 = vrot.lane.b32.xlu1 %v849_v48, %s1268_s4 }
 0xba1   :  { %v852_v25 = vpop.permute.xlu1 %851 }
 0xba2   :  { %v854_v26 = vadd.f32 %v852_v25, %v848_v4 }
 0xba4   :  { %1189 = vtanh.f32 %v854_v26 }
 0xbae   :  { %v1190_v36 = vpop.eup %1189 }
 0xbaf   :  { %v856_v49 = vmul.f32 %v1190_v36, %v847_v45 }
 0xbb1   :  { %v860_v59 = vpack.c.bf16 %v856_v49, %v856_v49 }
 0xbb3   :  { %862 = vrot.lane.b32.xlu0 %v860_v59, %s1268_s4 }
 0xc25   :  { %v863_v60 = vpop.permute.xlu0 %862 }
 0xc26   :  { %1071 = vmatmul.mubr.msk.bf16.vlgmr.msra.gmra.mrb[24].mxu0 %vm231_vm0, %v863_v60 }
 0xcf9   :  { %v901_v2 = vpop.f32.mrb[24].mxu0 }
 0xcfa   :  { %v908_v0 = vadd.f32 %v901_v2, %v309_v61  ;;  %v903_v3 = vpop.f32.mrb[25].mxu0 }
 0xcfb   :  { %v909_v5 = vadd.f32 %v903_v3, %v311_v62  ;;  %v905_v7 = vpop.f32.mrb[26].mxu0 }
 0xcfc   :  { %v1072_v9 = vmul.f32 -1.442695, %v908_v0  ;;  %v906_v11 = vpop.f32.mrb[27].mxu0 }
 0xcfd   :  { %v1073_v13 = vmul.f32 -1.442695, %v909_v5 }
 0xcfe   :  { %1191 = vpow2.f32 %v1072_v9 }
 0xcff   :  { %1193 = vpow2.f32 %v1073_v13 }
 0xd00   :  { %1195 = vtanh.f32 %v909_v5 }
 0xd08   :  { %v1192_v15 = vpop.eup %1191 }
 0xd09   :  { %v1194_v17 = vpop.eup %1193  ;;  %v918_v19 = vadd.f32 1.0, %v1192_v15 }
 0xd0a   :  { %v919_v20 = vadd.f32 1.0, %v1194_v17  ;;  %v1196_v54 = vpop.eup %1195 }
 0xd0c   :  { %1197 = vrcp.f32 %v919_v20 }
 0xd0d   :  { %1199 = vrcp.f32 %v918_v19 }
 0xd16   :  { %v1198_v21 = vpop.eup %1197 }
 0xd17   :  { %v1200_v56 = vpop.eup %1199  ;;  %v925_v22 = vsel %vm347_vm1, %v1196_v54, %v1198_v21 }
 0xd18   :  { %v927_v23 = vmul.f32 %v1200_v56, %v925_v22  ;;  %v926_v24 = vmul.f32 %v1200_v56, %v854_v26 }
 0xd1a   :  { %929 = vrot.lane.b32.xlu1 %v927_v23, %s1268_s4 }
 0xd8c   :  { %v930_v27 = vpop.permute.xlu1 %929 }
 0xd8d   :  { %v932_v50 = vadd.f32 %v930_v27, %v926_v24 }
 0xd8f   :  { %1201 = vtanh.f32 %v932_v50 }
 0xd99   :  { %v1202_v28 = vpop.eup %1201 }
 0xd9a   :  { %v934_v51 = vmul.f32 %v1202_v28, %v925_v22 }
 0xd9c   :  { %v938_v29 = vpack.c.bf16 %v934_v51, %v934_v51 }
 0xd9e   :  { %940 = vrot.lane.b32.xlu0 %v938_v29, %s1268_s4 }
 0xe10   :  { %v941_v30 = vpop.permute.xlu0 %940 }
 0xe11   :  { %1074 = vmatmul.mubr.msk.bf16.vlgmr.msra.gmra.mrb[16].mxu1 %vm231_vm0, %v941_v30 }
 0xee4   :  { %v979_v55 = vpop.f32.mrb[16].mxu1 }
 0xee5   :  { %v986_v33 = vadd.f32 %v979_v55, %v313_v31  ;;  %v981_v34 = vpop.f32.mrb[17].mxu1 }
 0xee6   :  { %v987_v35 = vadd.f32 %v981_v34, %v315_v32  ;;  %v983_v37 = vpop.f32.mrb[18].mxu1 }
 0xee7   :  { %v1075_v38 = vmul.f32 -1.442695, %v986_v33  ;;  %v984_v6 = vpop.f32.mrb[19].mxu1 }
 0xee8   :  { %v1076_v39 = vmul.f32 -1.442695, %v987_v35 }
 0xee9   :  { %1203 = vpow2.f32 %v1075_v38 }
 0xeea   :  { %1205 = vpow2.f32 %v1076_v39 }
 0xeeb   :  { %1207 = vtanh.f32 %v987_v35 }
 0xef3   :  { %v1204_v1 = vpop.eup %1203 }
 0xef4   :  { %v1206_v40 = vpop.eup %1205  ;;  %v996_v8 = vadd.f32 1.0, %v1204_v1 }
 0xef5   :  { %v997_v41 = vadd.f32 1.0, %v1206_v40  ;;  %v1208_v46 = vpop.eup %1207 }
 0xef7   :  { %1209 = vrcp.f32 %v997_v41 }
 0xef8   :  { %1211 = vrcp.f32 %v996_v8 }
 0xf01   :  { %v1210_v57 = vpop.eup %1209 }
 0xf02   :  { %v1212_v47 = vpop.eup %1211  ;;  %v1003_v58 = vsel %vm347_vm1, %v1208_v46, %v1210_v57 }
 0xf03   :  { %v1005_v10 = vmul.f32 %v1212_v47, %v1003_v58  ;;  %v1004_v42 = vmul.f32 %v1212_v47, %v932_v50 }
 0xf05   :  { %1007 = vrot.lane.b32.xlu1 %v1005_v10, %s1268_s4 }
 0xf77   :  { %v1008_v12 = vpop.permute.xlu1 %1007 }
 0xf78   :  { %v1010_v14 = vadd.f32 %v1008_v12, %v1004_v42 }
 0xf7a   :  { %1213 = vtanh.f32 %v1010_v14 }
 0xf84   :  { %v1214_v16 = vpop.eup %1213 }
 0xf85   :  { %v1012_v43 = vmul.f32 %v1214_v16, %v1003_v58 }
 0xf87   :  { %1014 = vrot.lane.b32.xlu0 %v1012_v43, %s1268_s4 }
 0xff9   :  { %v1015_v18 = vpop.permute.xlu0 %1014 }
 0xffa   :  { %1017 = vst.msk [vmem:[#allocation6] sm:$0xff] %vm231_vm0, %v1015_v18 }
 0xffb   :  { %1248 = shalt.err (!%p1245_p12)
}
 0xffc   :  { %s1249_s24 = scalar_lea.hbm %s1625_s6, 128 }
 0xffd   :  { %p1250_p13 = scmp.ne.s32.totalorder %s1625_s6, %s1249_s24  ;;  %p1253_p0 = scmp.lt.u32.totalorder %s1249_s24, %s1625_s6 }
 0xfff   :  { %p1255_p1 = pnand %p1253_p0, %p1250_p13 }
0x1001   :  { %1258 = shalt.err (!%p1255_p1)
}
0x1002   :  { %1027 = dma.vmem_to_hbm [thread:$0]  %s1025_s20, 128, %s1625_s6, [#allocation5]  }
0x1003   :  { %1261 = dma.done.wait [#allocation5], 128  }
0x1004   :  { %1262 = vsyncadd [#allocation5], 4294967168 }
0x1005   :  { %1031 = vsyncpa [#allocation4], 1 }
0x1006   :  { %1032 = vsyncpa [#allocation5], 1 }

</bundles_post_ra>
